<compile_context>
chip_gen: v6e
topology: v6e:2x2x1
jax: 0.10.0
libtpu: 0.0.40
codegen_flags: <defaults>
</compile_context>

<pallas_src>
import functools

import jax
import jax.numpy as jnp
from jax import lax
from jax.experimental import pallas as pl


def _activation(name, x):
    if name == "relu":
        return jnp.maximum(x, 0.0)
    if name == "elu":
        # exp evaluated on all elements; fine for forward (unselected branch dropped).
        return jnp.where(x > 0, x, jnp.exp(x) - 1.0)
    if name == "tanh":
        return jnp.tanh(x)
    if name == "leaky_relu":
        return jnp.where(x > 0, x, 0.01 * x)
    raise ValueError(f"unknown activation: {name}")


def densenet_kernel(x_ref, params_ref, wout_ref, o_ref, *,
                    num_layers, act, eps, n_inv):
    L = num_layers
    x = x_ref[...]                                                # (N, F_max) f32
    lane = lax.broadcasted_iota(jnp.int32, x.shape, 1)            # (N, F_max)
    lane_row = lax.broadcasted_iota(jnp.int32, (1, x.shape[1]), 1)  # (1, F_max)
    bias_row = params_ref[3 * L:3 * L + 1, :]                     # bias of layer i at lane i

    # Running batch statistics, maintained incrementally across layers.
    s = jnp.sum(x, axis=0, keepdims=True)                         # (1, F_max)
    ss = jnp.sum(x * x, axis=0, keepdims=True)                    # (1, F_max)

    # Static unroll: L is small and layers are serially dependent (layer i+1's
    # stats need layer i's new column).
    # TODO(synk): switch to lax.fori_loop(..., unroll=True) + pl.ds row slicing
    # if num_layers grows past ~8-16 (vreg pressure / code size).
    for i in range(L):
        col = L - 1 - i                                           # prepend position

        # --- BatchNorm1d (training-mode biased batch stats) folded to one affine ---
        mean = s * n_inv
        var = jnp.maximum(ss * n_inv - mean * mean, 0.0)
        scale = params_ref[i:i + 1, :] * lax.rsqrt(var + eps)      # gamma row
        shift = params_ref[L + i:L + i + 1, :] - mean * scale      # beta row
        y = _activation(act, x * scale + shift)

        # --- fc1: (N,F)@(F,1) as VPU mul + XLU lane reduce (w zero-padded) ---
        b_i = jnp.sum(jnp.where(lane_row == i, bias_row, 0.0),
                      axis=1, keepdims=True)                       # (1, 1) scalar bias
        x0 = jnp.sum(y * params_ref[2 * L + i:2 * L + i + 1, :],
                     axis=1, keepdims=True) + b_i                  # (N, 1)

        # --- torch.cat((x0, x), dim=1): overwrite static column `col` ---
        x = jnp.where(lane == col, x0, x)

        # --- incremental stats update: only the new column changed ---
        col_mask = lane_row == col
        s = s + jnp.where(col_mask, jnp.sum(x0, axis=0, keepdims=True), 0.0)
        ss = ss + jnp.where(col_mask, jnp.sum(x0 * x0, axis=0, keepdims=True), 0.0)

    # --- out: Linear(F_final, 10) on the MXU; bias folded via the ones column ---
    out = jnp.dot(x, wout_ref[...], preferred_element_type=jnp.float32)
    o_ref[...] = out.astype(o_ref.dtype)


def pack_densenet_params(layer_params, w_out, b_out):
    """One-time (model-init) packing of all parameters.

    layer_params: list of (gamma, beta, w_row, bias) with PyTorch shapes
        (F_i,), (F_i,), (F_i,), scalar for F_i = F_in + i.
    w_out: (F_in + L, 10), b_out: (10,).

    Returns:
      params: (3L+1, F_max) f32  [gammas; betas; fc1 weights; fc1 biases@lane i]
      wout:   (F_max, 10)   f32  last row = b_out (dots with x's ones column)
      f_max, num_layers
    """
    num_layers = len(layer_params)
    f_in = layer_params[0][0].shape[0]
    f_max = f_in + num_layers + 1          # +1: constant-ones column (folds b_out)
    assert f_max <= 128, "single-vreg lane layout assumes F_max <= 128"

    rows = []
    for sel in range(3):                   # 0: gamma, 1: beta, 2: fc1 weight row
        for i, p in enumerate(layer_params):
            lead = num_layers - i          # leading zero pad; trailing pad = ones lane
            rows.append(jnp.pad(p[sel].astype(jnp.float32),
                                (lead, f_max - lead - p[sel].shape[0])))
    biases = jnp.asarray([p[3] for p in layer_params], jnp.float32)
    bias_row = jnp.zeros((f_max,), jnp.float32).at[:num_layers].set(biases)
    params = jnp.stack(rows + [bias_row])                          # (3L+1, F_max)

    wout = jnp.concatenate(
        [w_out.astype(jnp.float32),
         jnp.reshape(b_out.astype(jnp.float32), (1, -1))], axis=0)  # (F_max, n_out)
    return params, wout, f_max, num_layers


def densenet_forward(x, params, wout, *, num_layers, activation="relu", eps=1e-5):
    """x: (N, F_in). params/wout from pack_densenet_params."""
    n = x.shape[0]
    f_max = params.shape[1]
    n_out = wout.shape[1]

    # Right-aligned padded feature buffer + constant-ones column (output bias).
    # TODO(synk): at large N build this inside the kernel (avoids a second full
    # (N, F_max) HBM copy of x) and grid-tile the batch axis.
    x_pad = jnp.concatenate(
        [jnp.zeros((n, num_layers), jnp.float32),
         x.astype(jnp.float32),
         jnp.ones((n, 1), jnp.float32)], axis=1)                   # (N, F_max)

    kernel = functools.partial(densenet_kernel, num_layers=num_layers,
                               act=activation, eps=eps, n_inv=1.0 / n)

    return pl.pallas_call(
        kernel,
        out_shape=jax.ShapeDtypeStruct((n, n_out), jnp.float32),
        in_specs=[
            pl.BlockSpec((n, f_max), lambda: (0, 0)),
            pl.BlockSpec(params.shape, lambda: (0, 0)),
            pl.BlockSpec(wout.shape, lambda: (0, 0)),
        ],
        out_specs=pl.BlockSpec((n, n_out), lambda: (0, 0)),
    )(x_pad, params, wout)


if __name__ == "__main__":
    # Module spec: input_features = 59 (hard-coded in DenseNet),
    # config = {'num_layers': 4, 'k': 12, 'activation': 'relu'} (k unused in forward).
    N, F_IN, NUM_LAYERS, N_OUT = 8, 59, 4, 10
    ACT, EPS = "relu", 1e-5

    key = jax.random.PRNGKey(0)
    keys = jax.random.split(key, 3 + 4 * NUM_LAYERS)

    x = jax.random.normal(keys[0], (N, F_IN), dtype=jnp.float32)

    layer_params = []
    f = F_IN
    kidx = 1
    for i in range(NUM_LAYERS):
        bound = 1.0 / (f ** 0.5)
        gamma = jax.random.uniform(keys[kidx], (f,), minval=0.5, maxval=1.5); kidx += 1
        beta = jax.random.uniform(keys[kidx], (f,), minval=-0.1, maxval=0.1); kidx += 1
        w_row = jax.random.uniform(keys[kidx], (f,), minval=-bound, maxval=bound); kidx += 1
        bias = jax.random.uniform(keys[kidx], (), minval=-bound, maxval=bound); kidx += 1
        layer_params.append((gamma, beta, w_row, bias))
        f += 1
    bound = 1.0 / (f ** 0.5)
    w_out = jax.random.uniform(keys[kidx], (f, N_OUT), minval=-bound, maxval=bound)
    b_out = jax.random.uniform(keys[kidx + 1], (N_OUT,), minval=-bound, maxval=bound)

    # One-time packing (model-init time), then a jitted forward call.
    params, wout, f_max, _ = pack_densenet_params(layer_params, w_out, b_out)
    fwd = jax.jit(functools.partial(densenet_forward, num_layers=NUM_LAYERS,
                                    activation=ACT, eps=EPS))
    out = jax.block_until_ready(fwd(x, params, wout))

    # Pure-JAX reference mirroring the PyTorch DenseNet forward exactly.
    def ref_forward(xr):
        for gamma, beta, w_row, bias in layer_params:
            mean = jnp.mean(xr, axis=0, keepdims=True)
            var = jnp.mean((xr - mean) ** 2, axis=0, keepdims=True)   # biased var
            y = (xr - mean) / jnp.sqrt(var + EPS) * gamma + beta
            y = _activation(ACT, y)
            x0 = jnp.sum(y * w_row, axis=1, keepdims=True) + bias     # Linear(F,1)
            xr = jnp.concatenate([x0, xr], axis=1)                    # cat((x0, x), 1)
        return jnp.dot(xr, w_out, precision=jax.lax.Precision.HIGHEST) + b_out

    ref = ref_forward(x)
    assert out.shape == (N, N_OUT)
    max_err = float(jnp.max(jnp.abs(out - ref)))
    assert jnp.allclose(out, ref, atol=1e-3, rtol=1e-3), max_err

    print("KERNEL_OK")
</pallas_src>

<mosaic_0001>
module attributes {stable_mosaic.version = 11 : i64} {
  func.func @densenet_kernel(%arg0: memref<8x64xf32, #tpu.memory_space<vmem>>, %arg1: memref<13x64xf32, #tpu.memory_space<vmem>>, %arg2: memref<64x10xf32, #tpu.memory_space<vmem>>, %arg3: memref<8x10xf32, #tpu.memory_space<vmem>>) attributes {dimension_semantics = [], scalar_prefetch = 0 : i64, scratch_operands = 0 : i64, tpu.core_type = #tpu.core_type<tc>} {
    %c0 = arith.constant 0 : index
    %c0_0 = arith.constant 0 : index
    %0 = vector.load %arg0[%c0, %c0_0] : memref<8x64xf32, #tpu.memory_space<vmem>>, vector<8x64xf32>
    %1 = tpu.iota {dimensions = array<i32: 1>} : vector<8x64xi32>
    %2 = tpu.iota {dimensions = array<i32: 1>} : vector<1x64xi32>
    %c12 = arith.constant 12 : index
    %c0_1 = arith.constant 0 : index
    %3 = vector.load %arg1[%c12, %c0_1] : memref<13x64xf32, #tpu.memory_space<vmem>>, vector<1x64xf32>
    %cst = arith.constant dense<0.000000e+00> : vector<64xf32>
    %4 = vector.multi_reduction <add>, %0, %cst [0] : vector<8x64xf32> to vector<64xf32>
    %5 = vector.shape_cast %4 : vector<64xf32> to vector<1x64xf32>
    %6 = arith.mulf %0, %0 : vector<8x64xf32>
    %cst_2 = arith.constant dense<0.000000e+00> : vector<64xf32>
    %7 = vector.multi_reduction <add>, %6, %cst_2 [0] : vector<8x64xf32> to vector<64xf32>
    %8 = vector.shape_cast %7 : vector<64xf32> to vector<1x64xf32>
    %cst_3 = arith.constant 1.250000e-01 : f32
    %9 = vector.broadcast %cst_3 : f32 to vector<1x64xf32>
    %10 = arith.mulf %5, %9 : vector<1x64xf32>
    %cst_4 = arith.constant 1.250000e-01 : f32
    %11 = vector.broadcast %cst_4 : f32 to vector<1x64xf32>
    %12 = arith.mulf %8, %11 : vector<1x64xf32>
    %13 = arith.mulf %10, %10 : vector<1x64xf32>
    %14 = arith.subf %12, %13 : vector<1x64xf32>
    %cst_5 = arith.constant 0.000000e+00 : f32
    %15 = vector.broadcast %cst_5 : f32 to vector<1x64xf32>
    %16 = arith.maximumf %14, %15 : vector<1x64xf32>
    %c0_6 = arith.constant 0 : index
    %c0_7 = arith.constant 0 : index
    %17 = vector.load %arg1[%c0_6, %c0_7] : memref<13x64xf32, #tpu.memory_space<vmem>>, vector<1x64xf32>
    %cst_8 = arith.constant 9.99999974E-6 : f32
    %18 = vector.broadcast %cst_8 : f32 to vector<1x64xf32>
    %19 = arith.addf %16, %18 : vector<1x64xf32>
    %20 = math.rsqrt %19 : vector<1x64xf32>
    %21 = arith.mulf %17, %20 : vector<1x64xf32>
    %c4 = arith.constant 4 : index
    %c0_9 = arith.constant 0 : index
    %22 = vector.load %arg1[%c4, %c0_9] : memref<13x64xf32, #tpu.memory_space<vmem>>, vector<1x64xf32>
    %23 = arith.mulf %10, %21 : vector<1x64xf32>
    %24 = arith.subf %22, %23 : vector<1x64xf32>
    %25 = vector.broadcast %21 : vector<1x64xf32> to vector<8x64xf32>
    %26 = arith.mulf %0, %25 : vector<8x64xf32>
    %27 = vector.broadcast %24 : vector<1x64xf32> to vector<8x64xf32>
    %28 = arith.addf %26, %27 : vector<8x64xf32>
    %cst_10 = arith.constant 0.000000e+00 : f32
    %29 = vector.broadcast %cst_10 : f32 to vector<8x64xf32>
    %30 = arith.maximumf %28, %29 : vector<8x64xf32>
    %c0_i32 = arith.constant 0 : i32
    %31 = vector.broadcast %c0_i32 : i32 to vector<1x64xi32>
    %32 = arith.cmpi eq, %2, %31 : vector<1x64xi32>
    %cst_11 = arith.constant 0.000000e+00 : f32
    %33 = vector.broadcast %cst_11 : f32 to vector<1x64xf32>
    %34 = arith.select %32, %3, %33 : vector<1x64xi1>, vector<1x64xf32>
    %cst_12 = arith.constant dense<0.000000e+00> : vector<1xf32>
    %35 = vector.multi_reduction <add>, %34, %cst_12 [1] : vector<1x64xf32> to vector<1xf32>
    %36 = vector.shape_cast %35 : vector<1xf32> to vector<1x1xf32>
    %c8 = arith.constant 8 : index
    %c0_13 = arith.constant 0 : index
    %37 = vector.load %arg1[%c8, %c0_13] : memref<13x64xf32, #tpu.memory_space<vmem>>, vector<1x64xf32>
    %38 = vector.broadcast %37 : vector<1x64xf32> to vector<8x64xf32>
    %39 = arith.mulf %30, %38 : vector<8x64xf32>
    %cst_14 = arith.constant dense<0.000000e+00> : vector<8xf32>
    %40 = vector.multi_reduction <add>, %39, %cst_14 [1] : vector<8x64xf32> to vector<8xf32>
    %41 = vector.shape_cast %40 : vector<8xf32> to vector<8x1xf32>
    %42 = vector.broadcast %36 : vector<1x1xf32> to vector<8x1xf32>
    %43 = arith.addf %41, %42 : vector<8x1xf32>
    %c3_i32 = arith.constant 3 : i32
    %44 = vector.broadcast %c3_i32 : i32 to vector<8x64xi32>
    %45 = arith.cmpi eq, %1, %44 : vector<8x64xi32>
    %46 = vector.shape_cast %43 : vector<8x1xf32> to vector<8x1xf32>
    %47 = vector.broadcast %46 : vector<8x1xf32> to vector<8x64xf32>
    %48 = arith.select %45, %47, %0 : vector<8x64xi1>, vector<8x64xf32>
    %c3_i32_15 = arith.constant 3 : i32
    %49 = vector.broadcast %c3_i32_15 : i32 to vector<1x64xi32>
    %50 = arith.cmpi eq, %2, %49 : vector<1x64xi32>
    %cst_16 = arith.constant dense<0.000000e+00> : vector<1xf32>
    %51 = vector.multi_reduction <add>, %43, %cst_16 [0] : vector<8x1xf32> to vector<1xf32>
    %52 = vector.shape_cast %51 : vector<1xf32> to vector<1x1xf32>
    %cst_17 = arith.constant 0.000000e+00 : f32
    %53 = vector.shape_cast %52 : vector<1x1xf32> to vector<1x1xf32>
    %54 = vector.broadcast %53 : vector<1x1xf32> to vector<1x64xf32>
    %55 = vector.broadcast %cst_17 : f32 to vector<1x64xf32>
    %56 = arith.select %50, %54, %55 : vector<1x64xi1>, vector<1x64xf32>
    %57 = arith.addf %5, %56 : vector<1x64xf32>
    %58 = arith.mulf %43, %43 : vector<8x1xf32>
    %cst_18 = arith.constant dense<0.000000e+00> : vector<1xf32>
    %59 = vector.multi_reduction <add>, %58, %cst_18 [0] : vector<8x1xf32> to vector<1xf32>
    %60 = vector.shape_cast %59 : vector<1xf32> to vector<1x1xf32>
    %cst_19 = arith.constant 0.000000e+00 : f32
    %61 = vector.shape_cast %60 : vector<1x1xf32> to vector<1x1xf32>
    %62 = vector.broadcast %61 : vector<1x1xf32> to vector<1x64xf32>
    %63 = vector.broadcast %cst_19 : f32 to vector<1x64xf32>
    %64 = arith.select %50, %62, %63 : vector<1x64xi1>, vector<1x64xf32>
    %65 = arith.addf %8, %64 : vector<1x64xf32>
    %cst_20 = arith.constant 1.250000e-01 : f32
    %66 = vector.broadcast %cst_20 : f32 to vector<1x64xf32>
    %67 = arith.mulf %57, %66 : vector<1x64xf32>
    %cst_21 = arith.constant 1.250000e-01 : f32
    %68 = vector.broadcast %cst_21 : f32 to vector<1x64xf32>
    %69 = arith.mulf %65, %68 : vector<1x64xf32>
    %70 = arith.mulf %67, %67 : vector<1x64xf32>
    %71 = arith.subf %69, %70 : vector<1x64xf32>
    %cst_22 = arith.constant 0.000000e+00 : f32
    %72 = vector.broadcast %cst_22 : f32 to vector<1x64xf32>
    %73 = arith.maximumf %71, %72 : vector<1x64xf32>
    %c1 = arith.constant 1 : index
    %c0_23 = arith.constant 0 : index
    %74 = vector.load %arg1[%c1, %c0_23] : memref<13x64xf32, #tpu.memory_space<vmem>>, vector<1x64xf32>
    %cst_24 = arith.constant 9.99999974E-6 : f32
    %75 = vector.broadcast %cst_24 : f32 to vector<1x64xf32>
    %76 = arith.addf %73, %75 : vector<1x64xf32>
    %77 = math.rsqrt %76 : vector<1x64xf32>
    %78 = arith.mulf %74, %77 : vector<1x64xf32>
    %c5 = arith.constant 5 : index
    %c0_25 = arith.constant 0 : index
    %79 = vector.load %arg1[%c5, %c0_25] : memref<13x64xf32, #tpu.memory_space<vmem>>, vector<1x64xf32>
    %80 = arith.mulf %67, %78 : vector<1x64xf32>
    %81 = arith.subf %79, %80 : vector<1x64xf32>
    %82 = vector.broadcast %78 : vector<1x64xf32> to vector<8x64xf32>
    %83 = arith.mulf %48, %82 : vector<8x64xf32>
    %84 = vector.broadcast %81 : vector<1x64xf32> to vector<8x64xf32>
    %85 = arith.addf %83, %84 : vector<8x64xf32>
    %cst_26 = arith.constant 0.000000e+00 : f32
    %86 = vector.broadcast %cst_26 : f32 to vector<8x64xf32>
    %87 = arith.maximumf %85, %86 : vector<8x64xf32>
    %c1_i32 = arith.constant 1 : i32
    %88 = vector.broadcast %c1_i32 : i32 to vector<1x64xi32>
    %89 = arith.cmpi eq, %2, %88 : vector<1x64xi32>
    %cst_27 = arith.constant 0.000000e+00 : f32
    %90 = vector.broadcast %cst_27 : f32 to vector<1x64xf32>
    %91 = arith.select %89, %3, %90 : vector<1x64xi1>, vector<1x64xf32>
    %cst_28 = arith.constant dense<0.000000e+00> : vector<1xf32>
    %92 = vector.multi_reduction <add>, %91, %cst_28 [1] : vector<1x64xf32> to vector<1xf32>
    %93 = vector.shape_cast %92 : vector<1xf32> to vector<1x1xf32>
    %c9 = arith.constant 9 : index
    %c0_29 = arith.constant 0 : index
    %94 = vector.load %arg1[%c9, %c0_29] : memref<13x64xf32, #tpu.memory_space<vmem>>, vector<1x64xf32>
    %95 = vector.broadcast %94 : vector<1x64xf32> to vector<8x64xf32>
    %96 = arith.mulf %87, %95 : vector<8x64xf32>
    %cst_30 = arith.constant dense<0.000000e+00> : vector<8xf32>
    %97 = vector.multi_reduction <add>, %96, %cst_30 [1] : vector<8x64xf32> to vector<8xf32>
    %98 = vector.shape_cast %97 : vector<8xf32> to vector<8x1xf32>
    %99 = vector.broadcast %93 : vector<1x1xf32> to vector<8x1xf32>
    %100 = arith.addf %98, %99 : vector<8x1xf32>
    %c2_i32 = arith.constant 2 : i32
    %101 = vector.broadcast %c2_i32 : i32 to vector<8x64xi32>
    %102 = arith.cmpi eq, %1, %101 : vector<8x64xi32>
    %103 = vector.shape_cast %100 : vector<8x1xf32> to vector<8x1xf32>
    %104 = vector.broadcast %103 : vector<8x1xf32> to vector<8x64xf32>
    %105 = arith.select %102, %104, %48 : vector<8x64xi1>, vector<8x64xf32>
    %c2_i32_31 = arith.constant 2 : i32
    %106 = vector.broadcast %c2_i32_31 : i32 to vector<1x64xi32>
    %107 = arith.cmpi eq, %2, %106 : vector<1x64xi32>
    %cst_32 = arith.constant dense<0.000000e+00> : vector<1xf32>
    %108 = vector.multi_reduction <add>, %100, %cst_32 [0] : vector<8x1xf32> to vector<1xf32>
    %109 = vector.shape_cast %108 : vector<1xf32> to vector<1x1xf32>
    %cst_33 = arith.constant 0.000000e+00 : f32
    %110 = vector.shape_cast %109 : vector<1x1xf32> to vector<1x1xf32>
    %111 = vector.broadcast %110 : vector<1x1xf32> to vector<1x64xf32>
    %112 = vector.broadcast %cst_33 : f32 to vector<1x64xf32>
    %113 = arith.select %107, %111, %112 : vector<1x64xi1>, vector<1x64xf32>
    %114 = arith.addf %57, %113 : vector<1x64xf32>
    %115 = arith.mulf %100, %100 : vector<8x1xf32>
    %cst_34 = arith.constant dense<0.000000e+00> : vector<1xf32>
    %116 = vector.multi_reduction <add>, %115, %cst_34 [0] : vector<8x1xf32> to vector<1xf32>
    %117 = vector.shape_cast %116 : vector<1xf32> to vector<1x1xf32>
    %cst_35 = arith.constant 0.000000e+00 : f32
    %118 = vector.shape_cast %117 : vector<1x1xf32> to vector<1x1xf32>
    %119 = vector.broadcast %118 : vector<1x1xf32> to vector<1x64xf32>
    %120 = vector.broadcast %cst_35 : f32 to vector<1x64xf32>
    %121 = arith.select %107, %119, %120 : vector<1x64xi1>, vector<1x64xf32>
    %122 = arith.addf %65, %121 : vector<1x64xf32>
    %cst_36 = arith.constant 1.250000e-01 : f32
    %123 = vector.broadcast %cst_36 : f32 to vector<1x64xf32>
    %124 = arith.mulf %114, %123 : vector<1x64xf32>
    %cst_37 = arith.constant 1.250000e-01 : f32
    %125 = vector.broadcast %cst_37 : f32 to vector<1x64xf32>
    %126 = arith.mulf %122, %125 : vector<1x64xf32>
    %127 = arith.mulf %124, %124 : vector<1x64xf32>
    %128 = arith.subf %126, %127 : vector<1x64xf32>
    %cst_38 = arith.constant 0.000000e+00 : f32
    %129 = vector.broadcast %cst_38 : f32 to vector<1x64xf32>
    %130 = arith.maximumf %128, %129 : vector<1x64xf32>
    %c2 = arith.constant 2 : index
    %c0_39 = arith.constant 0 : index
    %131 = vector.load %arg1[%c2, %c0_39] : memref<13x64xf32, #tpu.memory_space<vmem>>, vector<1x64xf32>
    %cst_40 = arith.constant 9.99999974E-6 : f32
    %132 = vector.broadcast %cst_40 : f32 to vector<1x64xf32>
    %133 = arith.addf %130, %132 : vector<1x64xf32>
    %134 = math.rsqrt %133 : vector<1x64xf32>
    %135 = arith.mulf %131, %134 : vector<1x64xf32>
    %c6 = arith.constant 6 : index
    %c0_41 = arith.constant 0 : index
    %136 = vector.load %arg1[%c6, %c0_41] : memref<13x64xf32, #tpu.memory_space<vmem>>, vector<1x64xf32>
    %137 = arith.mulf %124, %135 : vector<1x64xf32>
    %138 = arith.subf %136, %137 : vector<1x64xf32>
    %139 = vector.broadcast %135 : vector<1x64xf32> to vector<8x64xf32>
    %140 = arith.mulf %105, %139 : vector<8x64xf32>
    %141 = vector.broadcast %138 : vector<1x64xf32> to vector<8x64xf32>
    %142 = arith.addf %140, %141 : vector<8x64xf32>
    %cst_42 = arith.constant 0.000000e+00 : f32
    %143 = vector.broadcast %cst_42 : f32 to vector<8x64xf32>
    %144 = arith.maximumf %142, %143 : vector<8x64xf32>
    %c2_i32_43 = arith.constant 2 : i32
    %145 = vector.broadcast %c2_i32_43 : i32 to vector<1x64xi32>
    %146 = arith.cmpi eq, %2, %145 : vector<1x64xi32>
    %cst_44 = arith.constant 0.000000e+00 : f32
    %147 = vector.broadcast %cst_44 : f32 to vector<1x64xf32>
    %148 = arith.select %146, %3, %147 : vector<1x64xi1>, vector<1x64xf32>
    %cst_45 = arith.constant dense<0.000000e+00> : vector<1xf32>
    %149 = vector.multi_reduction <add>, %148, %cst_45 [1] : vector<1x64xf32> to vector<1xf32>
    %150 = vector.shape_cast %149 : vector<1xf32> to vector<1x1xf32>
    %c10 = arith.constant 10 : index
    %c0_46 = arith.constant 0 : index
    %151 = vector.load %arg1[%c10, %c0_46] : memref<13x64xf32, #tpu.memory_space<vmem>>, vector<1x64xf32>
    %152 = vector.broadcast %151 : vector<1x64xf32> to vector<8x64xf32>
    %153 = arith.mulf %144, %152 : vector<8x64xf32>
    %cst_47 = arith.constant dense<0.000000e+00> : vector<8xf32>
    %154 = vector.multi_reduction <add>, %153, %cst_47 [1] : vector<8x64xf32> to vector<8xf32>
    %155 = vector.shape_cast %154 : vector<8xf32> to vector<8x1xf32>
    %156 = vector.broadcast %150 : vector<1x1xf32> to vector<8x1xf32>
    %157 = arith.addf %155, %156 : vector<8x1xf32>
    %c1_i32_48 = arith.constant 1 : i32
    %158 = vector.broadcast %c1_i32_48 : i32 to vector<8x64xi32>
    %159 = arith.cmpi eq, %1, %158 : vector<8x64xi32>
    %160 = vector.shape_cast %157 : vector<8x1xf32> to vector<8x1xf32>
    %161 = vector.broadcast %160 : vector<8x1xf32> to vector<8x64xf32>
    %162 = arith.select %159, %161, %105 : vector<8x64xi1>, vector<8x64xf32>
    %c1_i32_49 = arith.constant 1 : i32
    %163 = vector.broadcast %c1_i32_49 : i32 to vector<1x64xi32>
    %164 = arith.cmpi eq, %2, %163 : vector<1x64xi32>
    %cst_50 = arith.constant dense<0.000000e+00> : vector<1xf32>
    %165 = vector.multi_reduction <add>, %157, %cst_50 [0] : vector<8x1xf32> to vector<1xf32>
    %166 = vector.shape_cast %165 : vector<1xf32> to vector<1x1xf32>
    %cst_51 = arith.constant 0.000000e+00 : f32
    %167 = vector.shape_cast %166 : vector<1x1xf32> to vector<1x1xf32>
    %168 = vector.broadcast %167 : vector<1x1xf32> to vector<1x64xf32>
    %169 = vector.broadcast %cst_51 : f32 to vector<1x64xf32>
    %170 = arith.select %164, %168, %169 : vector<1x64xi1>, vector<1x64xf32>
    %171 = arith.addf %114, %170 : vector<1x64xf32>
    %172 = arith.mulf %157, %157 : vector<8x1xf32>
    %cst_52 = arith.constant dense<0.000000e+00> : vector<1xf32>
    %173 = vector.multi_reduction <add>, %172, %cst_52 [0] : vector<8x1xf32> to vector<1xf32>
    %174 = vector.shape_cast %173 : vector<1xf32> to vector<1x1xf32>
    %cst_53 = arith.constant 0.000000e+00 : f32
    %175 = vector.shape_cast %174 : vector<1x1xf32> to vector<1x1xf32>
    %176 = vector.broadcast %175 : vector<1x1xf32> to vector<1x64xf32>
    %177 = vector.broadcast %cst_53 : f32 to vector<1x64xf32>
    %178 = arith.select %164, %176, %177 : vector<1x64xi1>, vector<1x64xf32>
    %179 = arith.addf %122, %178 : vector<1x64xf32>
    %cst_54 = arith.constant 1.250000e-01 : f32
    %180 = vector.broadcast %cst_54 : f32 to vector<1x64xf32>
    %181 = arith.mulf %171, %180 : vector<1x64xf32>
    %cst_55 = arith.constant 1.250000e-01 : f32
    %182 = vector.broadcast %cst_55 : f32 to vector<1x64xf32>
    %183 = arith.mulf %179, %182 : vector<1x64xf32>
    %184 = arith.mulf %181, %181 : vector<1x64xf32>
    %185 = arith.subf %183, %184 : vector<1x64xf32>
    %cst_56 = arith.constant 0.000000e+00 : f32
    %186 = vector.broadcast %cst_56 : f32 to vector<1x64xf32>
    %187 = arith.maximumf %185, %186 : vector<1x64xf32>
    %c3 = arith.constant 3 : index
    %c0_57 = arith.constant 0 : index
    %188 = vector.load %arg1[%c3, %c0_57] : memref<13x64xf32, #tpu.memory_space<vmem>>, vector<1x64xf32>
    %cst_58 = arith.constant 9.99999974E-6 : f32
    %189 = vector.broadcast %cst_58 : f32 to vector<1x64xf32>
    %190 = arith.addf %187, %189 : vector<1x64xf32>
    %191 = math.rsqrt %190 : vector<1x64xf32>
    %192 = arith.mulf %188, %191 : vector<1x64xf32>
    %c7 = arith.constant 7 : index
    %c0_59 = arith.constant 0 : index
    %193 = vector.load %arg1[%c7, %c0_59] : memref<13x64xf32, #tpu.memory_space<vmem>>, vector<1x64xf32>
    %194 = arith.mulf %181, %192 : vector<1x64xf32>
    %195 = arith.subf %193, %194 : vector<1x64xf32>
    %196 = vector.broadcast %192 : vector<1x64xf32> to vector<8x64xf32>
    %197 = arith.mulf %162, %196 : vector<8x64xf32>
    %198 = vector.broadcast %195 : vector<1x64xf32> to vector<8x64xf32>
    %199 = arith.addf %197, %198 : vector<8x64xf32>
    %cst_60 = arith.constant 0.000000e+00 : f32
    %200 = vector.broadcast %cst_60 : f32 to vector<8x64xf32>
    %201 = arith.maximumf %199, %200 : vector<8x64xf32>
    %c3_i32_61 = arith.constant 3 : i32
    %202 = vector.broadcast %c3_i32_61 : i32 to vector<1x64xi32>
    %203 = arith.cmpi eq, %2, %202 : vector<1x64xi32>
    %cst_62 = arith.constant 0.000000e+00 : f32
    %204 = vector.broadcast %cst_62 : f32 to vector<1x64xf32>
    %205 = arith.select %203, %3, %204 : vector<1x64xi1>, vector<1x64xf32>
    %cst_63 = arith.constant dense<0.000000e+00> : vector<1xf32>
    %206 = vector.multi_reduction <add>, %205, %cst_63 [1] : vector<1x64xf32> to vector<1xf32>
    %207 = vector.shape_cast %206 : vector<1xf32> to vector<1x1xf32>
    %c11 = arith.constant 11 : index
    %c0_64 = arith.constant 0 : index
    %208 = vector.load %arg1[%c11, %c0_64] : memref<13x64xf32, #tpu.memory_space<vmem>>, vector<1x64xf32>
    %209 = vector.broadcast %208 : vector<1x64xf32> to vector<8x64xf32>
    %210 = arith.mulf %201, %209 : vector<8x64xf32>
    %cst_65 = arith.constant dense<0.000000e+00> : vector<8xf32>
    %211 = vector.multi_reduction <add>, %210, %cst_65 [1] : vector<8x64xf32> to vector<8xf32>
    %212 = vector.shape_cast %211 : vector<8xf32> to vector<8x1xf32>
    %213 = vector.broadcast %207 : vector<1x1xf32> to vector<8x1xf32>
    %214 = arith.addf %212, %213 : vector<8x1xf32>
    %c0_i32_66 = arith.constant 0 : i32
    %215 = vector.broadcast %c0_i32_66 : i32 to vector<8x64xi32>
    %216 = arith.cmpi eq, %1, %215 : vector<8x64xi32>
    %217 = vector.shape_cast %214 : vector<8x1xf32> to vector<8x1xf32>
    %218 = vector.broadcast %217 : vector<8x1xf32> to vector<8x64xf32>
    %219 = arith.select %216, %218, %162 : vector<8x64xi1>, vector<8x64xf32>
    %c0_67 = arith.constant 0 : index
    %c0_68 = arith.constant 0 : index
    %220 = vector.load %arg2[%c0_67, %c0_68] : memref<64x10xf32, #tpu.memory_space<vmem>>, vector<64x10xf32>
    %cst_69 = arith.constant dense<0.000000e+00> : vector<8x10xf32>
    %221 = tpu.matmul %219, %220, %cst_69 {dimension_numbers = #tpu.dot_dimension_numbers<[1], [0], [0], [1], [0, 0, 1, 1], [], []>} : vector<8x64xf32>, vector<64x10xf32>, vector<8x10xf32> -> vector<8x10xf32>
    %c0_70 = arith.constant 0 : index
    %c0_71 = arith.constant 0 : index
    %222 = vector.load %arg3[%c0_70, %c0_71] : memref<8x10xf32, #tpu.memory_space<vmem>>, vector<8x10xf32>
    tpu.vector_store %arg3[%c0_70, %c0_71], %221 {strides = array<i32>} : memref<8x10xf32, #tpu.memory_space<vmem>>, vector<8x10xf32>,
    return
  }
}

</mosaic_0001>

<bundles_post_ra>
// kernel: densenet_forward.1
= control target key start
LH: loop header
LB: loop body
LE: loop exit
PB: predicated region body
PF: predicated region fallthrough
CT: control target
= control target key end

     0   :  { %v16_v0 = vlaneseq  ;;  %vm19_vm0 = vcmask 523264   ;;  %vm60_vm1 = vcmask 516096   ;;  %s607_s0 = inlined_call_operand.vmem [shape: f32[8,64], index: 0, kind: input, shape index: {}]   ;;  %s608_s1 = inlined_call_operand.vmem [shape: f32[13,64], index: 1, kind: input, shape index: {}]   ;;  %s609_s2 = inlined_call_operand.vmem [shape: f32[64,10], index: 2, kind: input, shape index: {}]   ;;  %s610_s3 = inlined_call_operand.hbm [shape: f32[8,10], index: 3, kind: output, shape index: {}]  }
   0x1   :  { %v448_v1 = vld [vmem:[%s607_s0] sm:$0xff]  ;;  %v459_v5 = vld [vmem:[%s608_s1 + $0xc] sm:$0x1] }
   0x2   :  { %v20_v2 = vsel %vm19_vm0, %v448_v1, 0.0  ;;  %v27_v3 = vmul.f32 %v448_v1, %v448_v1  ;;  %v454_v4 = vand.u32 127, %v16_v0 }
   0x3   :  { %v21_v6 = vrot.slane %v20_v2, 4 }
   0x4   :  { %v28_v7 = vsel %vm19_vm0, %v27_v3, 0.0 }
   0x5   :  { %8 = vsyncpa [#allocation3], 0  ;;  %vm58_vm2 = vcmp.eq.s32.totalorder %v454_v4, 0  ;;  %v22_v8 = vadd.f32 %v21_v6, %v20_v2  ;;  %v29_v9 = vrot.slane %v28_v7, 4  ;;  %v48_v27 = vshrl.u32 %v16_v0, 7 }
   0x6   :  { %v59_v10 = vsel %vm58_vm2, %v459_v5, 0.0  ;;  %v40_v28 = vld [vmem:[%s608_s1] sm:$0x1]  ;;  %v44_v32 = vld [vmem:[%s608_s1 + $0x4] sm:$0x1]  ;;  %vm120_vm3 = vcmp.eq.s32.totalorder %v454_v4, 1 }
   0x7   :  { %v61_v11 = vsel %vm60_vm1, %v59_v10, 0.0  ;;  %v23_v12 = vrot.slane %v22_v8, 2  ;;  %v30_v13 = vadd.f32 %v29_v9, %v28_v7  ;;  %v470_v29 = vsub.s32 0, %v48_v27  ;;  %v356_v39 = vld [vmem:[%s608_s1 + $0x8] ss:$0 sm:$0xff] }
   0x8   :  { %62 = vadd.xlane.f32.xlu0 %v61_v11  ;;  %v121_v43 = vsel %vm120_vm3, %v459_v5, 0.0  ;;  %vm78_vm4 = vcmp.eq.s32.totalorder %v454_v4, 3  ;;  %v102_v11 = vld [vmem:[%s608_s1 + $0x1] sm:$0x1]  ;;  %vm139_vm5 = vcmp.eq.s32.totalorder %v454_v4, 2  ;;  %vm423_vm6 = vmmov 0  }
   0x9   :  { %v24_v14 = vadd.f32 %v23_v12, %v22_v8  ;;  %v31_v15 = vrot.slane %v30_v13, 2  ;;  %v122_v44 = vsel %vm60_vm1, %v121_v43, 0.0  ;;  %vm340_vm7 = vcmask 80896  }
   0xa   :  { %123 = vadd.xlane.f32.xlu1 %v122_v44 }
   0xb   :  { %v25_v16 = vrot.slane %v24_v14, 1  ;;  %v32_v17 = vadd.f32 %v31_v15, %v30_v13 }
   0xd   :  { %v26_v18 = vadd.f32 %v25_v16, %v24_v14  ;;  %v33_v19 = vrot.slane %v32_v17, 1  ;;  %v106_v14 = vld [vmem:[%s608_s1 + $0x5] sm:$0x1] }
   0xf   :  { %v34_v20 = vadd.f32 %v33_v19, %v32_v17  ;;  %v35_v21 = vmul.f32 0.125, %v26_v18 }
  0x11   :  { %v36_v22 = vmul.f32 0.125, %v34_v20  ;;  %v37_v23 = vmul.f32 %v35_v21, %v35_v21 }
  0x13   :  { %v38_v24 = vsub.f32 %v36_v22, %v37_v23  ;;  %v357_v22 = vld [vmem:[%s608_s1 + $0x9] ss:$0 sm:$0xff] }
  0x15   :  { %v39_v25 = vmax.f32 %v38_v24, 0.0 }
  0x17   :  { %v41_v26 = vadd.f32 1e-05, %v39_v25 }
  0x19   :  { %392 = vrsqrt.f32 %v41_v26  ;;  %v181_v26 = vsel %vm139_vm5, %v459_v5, 0.0 }
  0x26   :  { %v393_v30 = vpop.eup %392 }
  0x27   :  { %v43_v31 = vmul.f32 %v393_v30, %v40_v28 }
  0x29   :  { %v45_v33 = vmul.f32 %v43_v31, %v35_v21  ;;  %v50_v34 = vrot.slane %v43_v31, %v470_v29 }
  0x2b   :  { %v46_v35 = vsub.f32 %v44_v32, %v45_v33  ;;  %v51_v36 = vmul.f32 %v50_v34, %v448_v1 }
  0x2d   :  { %v55_v37 = vrot.slane %v46_v35, %v470_v29 }
  0x2f   :  { %v56_v38 = vadd.f32 %v55_v37, %v51_v36 }
  0x31   :  { %v57_v40 = vmax.f32 %v56_v38, 0.0 }
  0x33   :  { %v69_v41 = vmul.f32 %v356_v39, %v57_v40 }
  0x35   :  { %v70_v42 = vsel %vm19_vm0, %v69_v41, 0.0 }
  0x36   :  { %71 = vadd.xlane.f32.xlu0 %v70_v42 }
  0x91   :  { %v63_v45 = vpop.xlane.xlu0 %62 }
  0x92   :  { %v76_v46 = vrot.slane %v63_v45, %v470_v29 }
  0x93   :  { %v124_v27 = vpop.xlane.xlu1 %123 }
  0x94   :  { %v137_v28 = vrot.slane %v124_v27, %v470_v29 }
  0xbf   :  { %v72_v47 = vpop.xlane.xlu0 %71 }
  0xc0   :  { %v77_v48 = vadd.f32 %v76_v46, %v72_v47 }
  0xc2   :  { %v80_v49 = vrot.slane %v77_v48, 4  ;;  %v88_v50 = vmul.f32 %v77_v48, %v77_v48 }
  0xc4   :  { %v81_v51 = vadd.f32 %v80_v49, %v77_v48  ;;  %v89_v52 = vrot.slane %v88_v50, 4 }
  0xc6   :  { %v82_v53 = vrot.slane %v81_v51, 2  ;;  %v90_v54 = vadd.f32 %v89_v52, %v88_v50 }
  0xc8   :  { %v83_v55 = vadd.f32 %v82_v53, %v81_v51  ;;  %v91_v56 = vrot.slane %v90_v54, 2 }
  0xca   :  { %v84_v57 = vrot.slane %v83_v55, 1  ;;  %v92_v58 = vadd.f32 %v91_v56, %v90_v54 }
  0xcc   :  { %v85_v59 = vadd.f32 %v84_v57, %v83_v55  ;;  %v93_v60 = vrot.slane %v92_v58, 1  ;;  %v163_v55 = vld [vmem:[%s608_s1 + $0x2] sm:$0x1] }
  0xce   :  { %v94_v61 = vadd.f32 %v93_v60, %v92_v58  ;;  %v86_v62 = vsel %vm78_vm4, %v85_v59, 0.0  ;;  %v167_v58 = vld [vmem:[%s608_s1 + $0x6] sm:$0x1] }
  0xcf   :  { %v87_v63 = vadd.f32 %v86_v62, %v26_v18  ;;  %v79_v18 = vsel %vm78_vm4, %v77_v48, %v448_v1  ;;  %v182_v1 = vsel %vm60_vm1, %v181_v26, 0.0 }
  0xd0   :  { %v95_v0 = vsel %vm78_vm4, %v94_v61, 0.0  ;;  %183 = vadd.xlane.f32.xlu0 %v182_v1 }
  0xd1   :  { %v96_v2 = vadd.f32 %v95_v0, %v34_v20  ;;  %v97_v3 = vmul.f32 0.125, %v87_v63 }
  0xd3   :  { %v98_v6 = vmul.f32 0.125, %v96_v2  ;;  %v99_v7 = vmul.f32 %v97_v3, %v97_v3 }
  0xd5   :  { %v100_v8 = vsub.f32 %v98_v6, %v99_v7 }
  0xd7   :  { %v101_v9 = vmax.f32 %v100_v8, 0.0 }
  0xd9   :  { %v103_v10 = vadd.f32 1e-05, %v101_v9  ;;  %v240_v9 = vsel %vm78_vm4, %v459_v5, 0.0  ;;  %v264_v5 = vld [vmem:[%s609_s2 + $0x28] sm:$0xff] }
  0xdb   :  { %394 = vrsqrt.f32 %v103_v10  ;;  %v241_v10 = vsel %vm60_vm1, %v240_v9, 0.0 }
  0xdc   :  { %242 = vadd.xlane.f32.xlu0 %v241_v10 }
  0xe8   :  { %v395_v12 = vpop.eup %394 }
  0xe9   :  { %v105_v13 = vmul.f32 %v395_v12, %v102_v11  ;;  %v266_v11 = vld [vmem:[%s609_s2 + $0x38] sm:$0xff]  ;;  %v422_v12 = vmov 0.0  }
  0xea   :  { %370 = vmatprep.subr.mxu0 %v422_v12  ;;  %386 = vmatprep.mubr.msk.f32.mxu0 %vm423_vm6, %v422_v12 }
  0xeb   :  { %v107_v15 = vmul.f32 %v105_v13, %v97_v3  ;;  %v112_v16 = vrot.slane %v105_v13, %v470_v29  ;;  %v358_v3 = vld [vmem:[%s608_s1 + $0xa] ss:$0 sm:$0xff]  ;;  %v265_v13 = vld [vmem:[%s609_s2 + $0x30] sm:$0xff]  ;;  %371 = vmatpush3.msra.mxu0 %v266_v11 }
  0xec   :  { %372 = vmatprep.subr.mxu0 %v422_v12 }
  0xed   :  { %v108_v17 = vsub.f32 %v106_v14, %v107_v15  ;;  %v113_v19 = vmul.f32 %v112_v16, %v79_v18  ;;  %373 = vmatpush3.msra.mxu0 %v265_v13  ;;  %v263_v14 = vld [vmem:[%s609_s2 + $0x20] sm:$0xff]  ;;  %v262_v15 = vld [vmem:[%s609_s2 + $0x18] sm:$0xff]  ;;  %v261_v16 = vld [vmem:[%s609_s2 + $0x10] sm:$0xff] }
  0xee   :  { %374 = vmatprep.subr.mxu0 %v422_v12 }
  0xef   :  { %v117_v20 = vrot.slane %v108_v17, %v470_v29  ;;  %375 = vmatpush3.msra.mxu0 %v264_v5 }
  0xf0   :  { %376 = vmatprep.subr.mxu0 %v422_v12 }
  0xf1   :  { %v118_v21 = vadd.f32 %v117_v20, %v113_v19  ;;  %377 = vmatpush3.msra.mxu0 %v263_v14 }
  0xf2   :  { %378 = vmatprep.subr.mxu0 %v422_v12 }
  0xf3   :  { %v119_v23 = vmax.f32 %v118_v21, 0.0  ;;  %379 = vmatpush3.msra.mxu0 %v262_v15 }
  0xf4   :  { %380 = vmatprep.subr.mxu0 %v422_v12 }
  0xf5   :  { %v130_v24 = vmul.f32 %v357_v22, %v119_v23  ;;  %381 = vmatpush3.msra.mxu0 %v261_v16 }
  0xf6   :  { %382 = vmatprep.subr.mxu0 %v422_v12 }
  0xf7   :  { %v131_v25 = vsel %vm19_vm0, %v130_v24, 0.0 }
  0xf8   :  { %132 = vadd.xlane.f32.xlu1 %v131_v25 }
 0x159   :  { %v184_v17 = vpop.xlane.xlu0 %183 }
 0x181   :  { %v133_v30 = vpop.xlane.xlu1 %132 }
 0x182   :  { %v138_v31 = vadd.f32 %v137_v28, %v133_v30 }
 0x184   :  { %v141_v32 = vrot.slane %v138_v31, 4  ;;  %v149_v33 = vmul.f32 %v138_v31, %v138_v31  ;;  %v533_v62 = vsel %vm139_vm5, %v138_v31, %v79_v18  ;;  %v197_v18 = vrot.slane %v184_v17, %v470_v29 }
 0x186   :  { %v142_v34 = vadd.f32 %v141_v32, %v138_v31  ;;  %v150_v35 = vrot.slane %v149_v33, 4 }
 0x188   :  { %v143_v36 = vrot.slane %v142_v34, 2  ;;  %v151_v37 = vadd.f32 %v150_v35, %v149_v33 }
 0x18a   :  { %v144_v38 = vadd.f32 %v143_v36, %v142_v34  ;;  %v152_v39 = vrot.slane %v151_v37, 2 }
 0x18c   :  { %v145_v40 = vrot.slane %v144_v38, 1  ;;  %v153_v41 = vadd.f32 %v152_v39, %v151_v37 }
 0x18e   :  { %v146_v42 = vadd.f32 %v145_v40, %v144_v38  ;;  %v154_v43 = vrot.slane %v153_v41, 1 }
 0x190   :  { %v147_v44 = vsel %vm139_vm5, %v146_v42, 0.0  ;;  %v155_v45 = vadd.f32 %v154_v43, %v153_v41 }
 0x191   :  { %v516_v46 = vadd.f32 %v147_v44, %v87_v63  ;;  %v222_v44 = vld [vmem:[%s608_s1 + $0x3] sm:$0x1] }
 0x192   :  { %v156_v47 = vsel %vm139_vm5, %v155_v45, 0.0 }
 0x193   :  { %v520_v48 = vadd.f32 %v156_v47, %v96_v2  ;;  %v158_v49 = vmul.f32 0.125, %v516_v46 }
 0x195   :  { %v159_v50 = vmul.f32 0.125, %v520_v48  ;;  %v160_v51 = vmul.f32 %v158_v49, %v158_v49 }
 0x197   :  { %v161_v52 = vsub.f32 %v159_v50, %v160_v51 }
 0x199   :  { %v162_v53 = vmax.f32 %v161_v52, 0.0 }
 0x19b   :  { %v164_v54 = vadd.f32 1e-05, %v162_v53 }
 0x19d   :  { %396 = vrsqrt.f32 %v164_v54 }
 0x1aa   :  { %v397_v56 = vpop.eup %396 }
 0x1ab   :  { %v166_v57 = vmul.f32 %v397_v56, %v163_v55  ;;  %v359_v55 = vld [vmem:[%s608_s1 + $0xb] ss:$0 sm:$0xff] }
 0x1ad   :  { %v168_v59 = vmul.f32 %v166_v57, %v158_v49  ;;  %v173_v60 = vrot.slane %v166_v57, %v470_v29 }
 0x1af   :  { %v169_v61 = vsub.f32 %v167_v58, %v168_v59  ;;  %v174_v63 = vmul.f32 %v173_v60, %v533_v62  ;;  %v260_v59 = vld [vmem:[%s609_s2 + $0x8] sm:$0xff]  ;;  %v259_v60 = vld [vmem:[%s609_s2] sm:$0xff] }
 0x1b0   :  { %383 = vmatpush3.msra.mxu0 %v260_v59 }
 0x1b1   :  { %v178_v0 = vrot.slane %v169_v61, %v470_v29  ;;  %384 = vmatprep.subr.mxu0 %v422_v12  ;;  %v243_v61 = vpop.xlane.xlu0 %242 }
 0x1b2   :  { %385 = vmatpush3.msra.mxu0 %v259_v60 }
 0x1b3   :  { %v179_v2 = vadd.f32 %v178_v0, %v174_v63 }
 0x1b5   :  { %v180_v6 = vmax.f32 %v179_v2, 0.0 }
 0x1b7   :  { %v190_v7 = vmul.f32 %v358_v3, %v180_v6 }
 0x1b9   :  { %v191_v8 = vsel %vm19_vm0, %v190_v7, 0.0 }
 0x1ba   :  { %192 = vadd.xlane.f32.xlu1 %v191_v8 }
 0x243   :  { %v193_v19 = vpop.xlane.xlu1 %192 }
 0x244   :  { %v198_v20 = vadd.f32 %v197_v18, %v193_v19 }
 0x246   :  { %v200_v21 = vrot.slane %v198_v20, 4  ;;  %v208_v22 = vmul.f32 %v198_v20, %v198_v20  ;;  %v199_v51 = vsel %vm120_vm3, %v198_v20, %v533_v62  ;;  %v256_v62 = vrot.slane %v243_v61, %v470_v29 }
 0x248   :  { %v201_v23 = vadd.f32 %v200_v21, %v198_v20  ;;  %v209_v24 = vrot.slane %v208_v22, 4 }
 0x24a   :  { %v202_v25 = vrot.slane %v201_v23, 2  ;;  %v210_v26 = vadd.f32 %v209_v24, %v208_v22 }
 0x24c   :  { %v203_v1 = vadd.f32 %v202_v25, %v201_v23  ;;  %v211_v27 = vrot.slane %v210_v26, 2 }
 0x24e   :  { %v204_v28 = vrot.slane %v203_v1, 1  ;;  %v212_v30 = vadd.f32 %v211_v27, %v210_v26 }
 0x250   :  { %v205_v31 = vadd.f32 %v204_v28, %v203_v1  ;;  %v213_v32 = vrot.slane %v212_v30, 1 }
 0x252   :  { %v214_v33 = vadd.f32 %v213_v32, %v212_v30  ;;  %v206_v34 = vsel %vm120_vm3, %v205_v31, 0.0 }
 0x253   :  { %v207_v35 = vadd.f32 %v206_v34, %v516_v46  ;;  %v226_v46 = vld [vmem:[%s608_s1 + $0x7] sm:$0x1]  ;;  %s424_s1 = smov [#allocation2]  }
 0x254   :  { %v215_v36 = vsel %vm120_vm3, %v214_v33, 0.0  ;;  %s348_s27 = sshll.u32 %s424_s1, 4  ;;  %s349_s27 = int_to_ptr.vmem [resolvable:$true] %s348_s27 }
 0x255   :  { %v216_v37 = vadd.f32 %v215_v36, %v520_v48  ;;  %v217_v38 = vmul.f32 0.125, %v207_v35  ;;  %s400_s2 = scalar_lea.vmem %s349_s27, 128  ;;  %p405_p1 = scmp.lt.s32.totalorder %s349_s27, %s349_s27 }
 0x256   :  { %p401_p0 = scmp.ne.s32.totalorder %s349_s27, %s400_s2  ;;  %p406_p2 = scmp.lt.s32.totalorder %s400_s2, %s400_s2 }
 0x257   :  { %v218_v39 = vmul.f32 0.125, %v216_v37  ;;  %v219_v40 = vmul.f32 %v217_v38, %v217_v38 }
 0x258   :  { %p407_p3 = por %p406_p2, %p405_p1 }
 0x259   :  { %v220_v41 = vsub.f32 %v218_v39, %v219_v40 }
 0x25a   :  { %p408_p4 = pnand %p407_p3, %p401_p0 }
 0x25b   :  { %v221_v42 = vmax.f32 %v220_v41, 0.0 }
 0x25d   :  { %v223_v43 = vadd.f32 1e-05, %v221_v42 }
 0x25f   :  { %398 = vrsqrt.f32 %v223_v43 }
 0x26c   :  { %v399_v45 = vpop.eup %398 }
 0x26d   :  { %v225_v47 = vmul.f32 %v399_v45, %v222_v44 }
 0x26f   :  { %v227_v49 = vmul.f32 %v225_v47, %v217_v38  ;;  %v232_v48 = vrot.slane %v225_v47, %v470_v29 }
 0x271   :  { %v228_v50 = vsub.f32 %v226_v46, %v227_v49  ;;  %v233_v52 = vmul.f32 %v232_v48, %v199_v51 }
 0x273   :  { %v237_v53 = vrot.slane %v228_v50, %v470_v29 }
 0x275   :  { %v238_v54 = vadd.f32 %v237_v53, %v233_v52 }
 0x277   :  { %v239_v56 = vmax.f32 %v238_v54, 0.0 }
 0x279   :  { %v249_v57 = vmul.f32 %v359_v55, %v239_v56 }
 0x27b   :  { %v250_v58 = vsel %vm19_vm0, %v249_v57, 0.0 }
 0x27c   :  { %251 = vadd.xlane.f32.xlu1 %v250_v58 }
 0x305   :  { %v252_v63 = vpop.xlane.xlu1 %251 }
 0x306   :  { %v257_v0 = vadd.f32 %v256_v62, %v252_v63 }
 0x308   :  { %v258_v2 = vsel %vm58_vm2, %v257_v0, %v199_v51 }
 0x309   :  { %387 = vmatmul.mubr.msk.f32.vlgmr.msra.gmra.mxu0 %vm19_vm0, %v258_v2 }
 0x3c9   :  { %v336_v3 = vpop.f32.mrf.mxu0 }
 0x3ca   :  { %341 = vst.msk [vmem:[#allocation2] sm:$0xff] %vm340_vm7, %v336_v3 }
 0x3cb   :  { %v388_v6 = vpop.f32.mrf.mxu0 }
 0x3cc   :  { %411 = shalt.err (!%p408_p4)
}
 0x3cd   :  { %351 = dma.vmem_to_hbm [thread:$0]  %s349_s27, 128, %s610_s3, [#allocation3]  }
 0x3ce   :  { %420 = dma.done.wait [#allocation3], 128  }
 0x3cf   :  { %421 = vsyncadd [#allocation3], 4294967168 }
 0x3d0   :  { %355 = vsyncpa [#allocation3], 1 }

</bundles_post_ra>
